<compile_context>
chip_gen: v6e
topology: v6e:2x2x1
jax: 0.10.0
libtpu: 0.0.40
codegen_flags: <defaults>
</compile_context>

<pallas_src>
import jax
import jax.numpy as jnp
import numpy as np
from jax.experimental import pallas as pl
from jax.experimental.pallas import tpu as pltpu


# ----------------------------- Pallas kernel --------------------------------

def _fused_gcn_kernel(a_ref, x_ref, w_ref, b_ref, o_ref):
    """Per-batch-step: out[b] = A @ (X[b] @ W) + bias, all VMEM-resident.

    a_ref: [N, N]    bf16   (resident across grid steps)
    x_ref: [1, N, D] bf16   (streamed per batch element)
    w_ref: [D, H]    bf16   (resident across grid steps)
    b_ref: [1, H]    f32    (resident across grid steps)
    o_ref: [1, N, H] f32
    """
    # Y = X @ W on the MXU, f32 accumulation.
    y = jnp.dot(x_ref[0], w_ref[...], preferred_element_type=jnp.float32)
    # Z = A @ Y (feed the MXU bf16 again), then fuse the bias add.
    z = jnp.dot(a_ref[...], y.astype(jnp.bfloat16),
                preferred_element_type=jnp.float32)
    o_ref[0] = (z + b_ref[...]).astype(o_ref.dtype)


def robust_gcn_forward(adj_bf16, x, weights_bf16, bias2d):
    """Fused Pallas forward: out[b] = adj @ (x[b] @ weights) + bias.

    adj_bf16:     [N, N]  bfloat16
    x:            [N, D] or [B, N, D]  (any float dtype; cast to bf16 here)
    weights_bf16: [D, H]  bfloat16
    bias2d:       [1, H]  float32
    Returns float32 [N, H] (unbatched input) or [B, N, H].
    """
    squeeze_batch = (x.ndim == 2)
    if squeeze_batch:
        x = x[None]
    B, N, D = x.shape
    H = weights_bf16.shape[1]
    assert adj_bf16.shape == (N, N) and weights_bf16.shape == (D, H)
    assert bias2d.shape == (1, H)

    x_bf16 = x.astype(jnp.bfloat16)

    cost = pl.CostEstimate(
        flops=B * (2 * N * D * H + 2 * N * N * H),
        transcendentals=0,
        bytes_accessed=(adj_bf16.size * 2 + x_bf16.size * 2
                        + weights_bf16.size * 2 + bias2d.size * 4
                        + B * N * H * 4),
    )

    out = pl.pallas_call(
        _fused_gcn_kernel,
        out_shape=jax.ShapeDtypeStruct((B, N, H), jnp.float32),
        grid=(B,),
        in_specs=[
            pl.BlockSpec((N, N), lambda b: (0, 0)),      # A, resident
            pl.BlockSpec((1, N, D), lambda b: (b, 0, 0)),  # X, streamed
            pl.BlockSpec((D, H), lambda b: (0, 0)),      # W, resident
            pl.BlockSpec((1, H), lambda b: (0, 0)),      # bias, resident
        ],
        out_specs=pl.BlockSpec((1, N, H), lambda b: (b, 0, 0)),
        compiler_params=pltpu.CompilerParams(
            dimension_semantics=("parallel",)),
        cost_estimate=cost,
    )(adj_bf16, x_bf16, weights_bf16, bias2d)

    return out[0] if squeeze_batch else out


_robust_gcn_forward_jit = jax.jit(robust_gcn_forward)


# --------------------------- RobustGCNLayer (JAX) ---------------------------

class RobustGCNLayerPallas:
    """JAX/Pallas port of RobustGCNLayer.forward (nodes=None path)."""

    def __init__(self, adj_dense: jnp.ndarray, dims, key):
        D, H = dims
        self.D, self.H = D, H
        k_w, k_b = jax.random.split(key)
        # nn.init.xavier_normal_: std = sqrt(2 / (fan_in + fan_out))
        std = float(np.sqrt(2.0 / (D + H)))
        w_f32 = (std * jax.random.normal(k_w, (D, H))).astype(jnp.float32)
        # nn.init.normal_: mean=0, std=1
        b_f32 = jax.random.normal(k_b, (H,)).astype(jnp.float32)

        # Constant prep hoisted out of the per-call path (done once here).
        self.weights = w_f32.astype(jnp.bfloat16)          # [D, H] bf16
        self.bias2d = b_f32.reshape(1, H)                   # [1, H] f32
        self.adj = adj_dense.astype(jnp.bfloat16)            # [N, N] bf16

    def forward(self, x):
        """x: [N, D] or [B, N, D] float; returns f32 [N, H] / [B, N, H]."""
        return _robust_gcn_forward_jit(self.adj, x, self.weights, self.bias2d)


# ---------------------------------- main -------------------------------------

def _build_adjacency(n_nodes: int, key) -> jnp.ndarray:
    """Deterministic symmetric, self-looped, sym-normalized adjacency (dense)."""
    probs = jax.random.uniform(key, (n_nodes, n_nodes))
    a = (probs < 0.25).astype(jnp.float32)
    a = jnp.maximum(a, a.T)                       # symmetrize
    a = a + jnp.eye(n_nodes, dtype=jnp.float32)   # self loops
    a = jnp.minimum(a, 1.0)
    deg = a.sum(axis=1)
    d_inv_sqrt = 1.0 / jnp.sqrt(deg)
    return (a * d_inv_sqrt[:, None]) * d_inv_sqrt[None, :]


if __name__ == "__main__":
    key = jax.random.PRNGKey(0)
    k_adj, k_x, k_params = jax.random.split(key, 3)

    B, N_NODES, D, H = 4, 16, 256, 128  # small shapes consistent with A@(X@W)+b

    adj = _build_adjacency(N_NODES, k_adj)
    x = jax.random.normal(k_x, (B, N_NODES, D), dtype=jnp.float32)

    layer = RobustGCNLayerPallas(adj, (D, H), k_params)

    out = layer.forward(x)
    out = jax.block_until_ready(out)

    # Reference (plain JAX, f32 math on the bf16-cast operands the kernel sees).
    a32 = layer.adj.astype(jnp.float32)
    w32 = layer.weights.astype(jnp.float32)
    x32 = x.astype(jnp.bfloat16).astype(jnp.float32)
    ref = jnp.einsum("ij,bjh->bih", a32, x32 @ w32) + layer.bias2d
    np.testing.assert_allclose(np.asarray(out), np.asarray(ref),
                               rtol=2e-2, atol=2e-2)

    # Also exercise the unbatched ([N, D]) path for parity with the original API.
    out1 = jax.block_until_ready(layer.forward(x[0]))
    np.testing.assert_allclose(np.asarray(out1), np.asarray(ref[0]),
                               rtol=2e-2, atol=2e-2)

    print("KERNEL_OK")
</pallas_src>

<mosaic_0001>
module attributes {stable_mosaic.version = 11 : i64} {
  func.func @_fused_gcn_kernel(%arg0: i32, %arg1: memref<16x16xbf16, #tpu.memory_space<vmem>>, %arg2: memref<1x16x256xbf16, #tpu.memory_space<vmem>>, %arg3: memref<256x128xbf16, #tpu.memory_space<vmem>>, %arg4: memref<1x128xf32, #tpu.memory_space<vmem>>, %arg5: memref<1x16x128xf32, #tpu.memory_space<vmem>>) attributes {dimension_semantics = [#tpu.dimension_semantics<parallel>], iteration_bounds = array<i64: 4>, scalar_prefetch = 0 : i64, scratch_operands = 0 : i64, tpu.core_type = #tpu.core_type<tc>, window_params = [{pipeline_mode = #tpu.pipeline_mode<synchronous>, transform_indices = @transform_0, window_bounds = array<i64: 16, 16>}, {transform_indices = @transform_1, window_bounds = array<i64: 1, 16, 256>}, {pipeline_mode = #tpu.pipeline_mode<synchronous>, transform_indices = @transform_2, window_bounds = array<i64: 256, 128>}, {pipeline_mode = #tpu.pipeline_mode<synchronous>, transform_indices = @transform_3, window_bounds = array<i64: 1, 128>}, {transform_indices = @transform_4, window_bounds = array<i64: 1, 16, 128>}]} {
    %c0 = arith.constant 0 : index
    %c0_0 = arith.constant 0 : index
    %c0_1 = arith.constant 0 : index
    %0 = vector.load %arg2[%c0, %c0_0, %c0_1] : memref<1x16x256xbf16, #tpu.memory_space<vmem>>, vector<1x16x256xbf16>
    %1 = vector.shape_cast %0 : vector<1x16x256xbf16> to vector<16x256xbf16>
    %c0_2 = arith.constant 0 : index
    %c0_3 = arith.constant 0 : index
    %2 = vector.load %arg3[%c0_2, %c0_3] : memref<256x128xbf16, #tpu.memory_space<vmem>>, vector<256x128xbf16>
    %cst = arith.constant dense<0.000000e+00> : vector<16x128xf32>
    %3 = tpu.matmul %1, %2, %cst {dimension_numbers = #tpu.dot_dimension_numbers<[1], [0], [0], [1], [0, 0, 1, 1], [], []>} : vector<16x256xbf16>, vector<256x128xbf16>, vector<16x128xf32> -> vector<16x128xf32>
    %c0_4 = arith.constant 0 : index
    %c0_5 = arith.constant 0 : index
    %4 = vector.load %arg1[%c0_4, %c0_5] : memref<16x16xbf16, #tpu.memory_space<vmem>>, vector<16x16xbf16>
    %5 = arith.truncf %3 : vector<16x128xf32> to vector<16x128xbf16>
    %cst_6 = arith.constant dense<0.000000e+00> : vector<16x128xf32>
    %6 = tpu.matmul %4, %5, %cst_6 {dimension_numbers = #tpu.dot_dimension_numbers<[1], [0], [0], [1], [0, 0, 1, 1], [], []>} : vector<16x16xbf16>, vector<16x128xbf16>, vector<16x128xf32> -> vector<16x128xf32>
    %c0_7 = arith.constant 0 : index
    %c0_8 = arith.constant 0 : index
    %7 = vector.load %arg4[%c0_7, %c0_8] : memref<1x128xf32, #tpu.memory_space<vmem>>, vector<1x128xf32>
    %8 = vector.broadcast %7 : vector<1x128xf32> to vector<16x128xf32>
    %9 = arith.addf %6, %8 : vector<16x128xf32>
    %c0_9 = arith.constant 0 : index
    %c0_10 = arith.constant 0 : index
    %c0_11 = arith.constant 0 : index
    %10 = vector.load %arg5[%c0_9, %c0_10, %c0_11] : memref<1x16x128xf32, #tpu.memory_space<vmem>>, vector<1x16x128xf32>
    %11 = vector.shape_cast %10 : vector<1x16x128xf32> to vector<16x128xf32>
    %12 = vector.shape_cast %9 : vector<16x128xf32> to vector<1x16x128xf32>
    tpu.vector_store %arg5[%c0_9, %c0_10, %c0_11], %12 {strides = array<i32>} : memref<1x16x128xf32, #tpu.memory_space<vmem>>, vector<1x16x128xf32>,
    return
  }
  func.func @transform_0(%arg0: i32) -> (i32, i32) {
    %c0_i32 = arith.constant 0 : i32
    %c0_i32_0 = arith.constant 0 : i32
    %c0_i32_1 = arith.constant 0 : i32
    return %c0_i32, %c0_i32_0 : i32, i32
  }
  func.func @transform_1(%arg0: i32) -> (i32, i32, i32) {
    %c0_i32 = arith.constant 0 : i32
    %c0_i32_0 = arith.constant 0 : i32
    %c0_i32_1 = arith.constant 0 : i32
    return %arg0, %c0_i32, %c0_i32_0 : i32, i32, i32
  }
  func.func @transform_2(%arg0: i32) -> (i32, i32) {
    %c0_i32 = arith.constant 0 : i32
    %c0_i32_0 = arith.constant 0 : i32
    %c0_i32_1 = arith.constant 0 : i32
    return %c0_i32, %c0_i32_0 : i32, i32
  }
  func.func @transform_3(%arg0: i32) -> (i32, i32) {
    %c0_i32 = arith.constant 0 : i32
    %c0_i32_0 = arith.constant 0 : i32
    %c0_i32_1 = arith.constant 0 : i32
    return %c0_i32, %c0_i32_0 : i32, i32
  }
  func.func @transform_4(%arg0: i32) -> (i32, i32, i32) {
    %c0_i32 = arith.constant 0 : i32
    %c0_i32_0 = arith.constant 0 : i32
    %c0_i32_1 = arith.constant 0 : i32
    return %arg0, %c0_i32, %c0_i32_0 : i32, i32, i32
  }
}

</mosaic_0001>

<bundles_post_ra>
// kernel: robust_gcn_forward.1
= control target key start
LH: loop header
LB: loop body
LE: loop exit
PB: predicated region body
PF: predicated region fallthrough
CT: control target
= control target key end

     0   :  { %9 = vsyncpa [#allocation3], 0  ;;  %s892_s0 = inlined_call_operand.vmem [shape: bf16[16,16], index: 0, kind: input, shape index: {}]   ;;  %s893_s1 = inlined_call_operand.vmem [shape: bf16[4,16,256], index: 1, kind: input, shape index: {}]   ;;  %s894_s2 = inlined_call_operand.vmem [shape: bf16[256,128], index: 2, kind: input, shape index: {}]   ;;  %s895_s3 = inlined_call_operand.vmem [shape: f32[1,128], index: 3, kind: input, shape index: {}]   ;;  %s896_s4 = inlined_call_operand.hbm [shape: f32[4,16,128], index: 4, kind: output, shape index: {}]  }
   0x1   :  { %11 = vsyncpa [#allocation3 + $0x1], 0  ;;  %s736_s15 = smov 0   ;;  %s738_s16 = smov 0  }
   0x2   :  { %s740_s17 = smov 0   ;;  %s742_s18 = smov 0  }
   0x3 LB: > { %s757_s19 = sadd.s32 4294967295, %s704_s18   ;;  %s516_s20 = sadd.s32 4294967294, %s704_s18   ;;  %s704_s18 = sphi %s742_s18, %s902_s18   ;;  %s700_s17 = sphi %s740_s17, %s901_s17   ;;  %s696_s16 = sphi %s738_s16, %s900_s16   ;;  %s692_s15 = sphi %s736_s15, %s899_s15  }
   0x4   : > { %s761_s21 = sadd.s32 1, %s704_s18   ;;  %s113_s22 = sadd.s32 1, %s700_s17 }
   0x5   : > { %s110_s23 = ssub.s32 %s704_s18, %s761_s21  ;;  %p123_p0 = scmp.ne.s32.totalorder %s700_s17, %s696_s16 }
   0x6   : > { %p111_p1 = scmp.eq.s32.totalorder %s110_s23, 0  ;;  %p124_p2 = scmp.eq.s32.totalorder %s757_s19, 3 }
   0x7   : > { %p129_p3 = scmp.ne.s32.totalorder %s696_s16, %s692_s15  ;;  %p130_p4 = scmp.eq.s32.totalorder %s516_s20, 3 }
   0x8   : > { %s772_s24 = scalar_select %p111_p1, %s700_s17, %s113_s22  }
   0x9   : > { %p774_p5 = por %p124_p2, %p123_p0  ;;  %p778_p6 = por %p130_p4, %p129_p3 }
   0xa   : > { %p519_p7 = scmp.ge.s32.totalorder %s704_s18, 1  ;;  %p165_p8 = scmp.lt.s32.totalorder %s704_s18, 5 }
   0xc   : > { %p166_p9 = pnand %p519_p7, %p165_p8 }
   0xd   : > { %p191_p10 = scmp.lt.s32.totalorder (!%p166_p9), %s757_s19, 3  ;;  %s550_s12 = sshll.u32 (!%p166_p9), %s757_s19, 8 }
   0xe   : > { %169 = sbr.rel (%p166_p9) target bundleno = 471 (0x1d7), region = 36  ;;  %s850_s20 = scalar_lea.hbm (!%p166_p9), %s896_s4, %s550_s12 }
  0x13   : > { %v624_v0 = vld [vmem:[%s894_s2 + $0x78] sm:$0xff]   ;;  %v626_v2 = vld [vmem:[%s894_s2 + $0x70] sm:$0xff]   ;;  %v628_v4 = vld [vmem:[%s894_s2 + $0x68] sm:$0xff]   ;;  %s192_s13 = scalar_select %p191_p10, %s757_s19, 3  ;;  %v706_v18 = vmov 0.0   ;;  %vm707_vm0 = vmmov 0  }
  0x14   : > { %v625_v1 = vld [vmem:[%s894_s2 + $0x38] sm:$0xff]   ;;  %551 = vmatprep.subr.bf16.mxu0 %v624_v0  ;;  %v627_v3 = vld [vmem:[%s894_s2 + $0x30] sm:$0xff]   ;;  %v629_v5 = vld [vmem:[%s894_s2 + $0x28] sm:$0xff]   ;;  %575 = vmatprep.subr.bf16.mxu1 %v706_v18  ;;  %vm393_vm1 = vcmask 130048   ;;  %s708_s19 = smov [#allocation2]  }
  0x15   : > { %552 = vmatpush3.bf16.msra.mxu0 %v625_v1  ;;  %v630_v6 = vld [vmem:[%s894_s2 + $0x60] sm:$0xff]   ;;  %s549_s27 = sshll.u32 %s192_s13, 4  ;;  %v632_v8 = vld [vmem:[%s894_s2 + $0x58] sm:$0xff]   ;;  %v634_v10 = vld [vmem:[%s894_s2 + $0x50] sm:$0xff]   ;;  %577 = vmatprep.mubr.msk.bf16.mxu1 %vm707_vm0, %v706_v18 }
  0x16   : > { %553 = vmatprep.subr.bf16.mxu0 %v626_v2  ;;  %v631_v7 = vld [vmem:[%s894_s2 + $0x20] sm:$0xff]   ;;  %s195_s6 = scalar_lea.vmem %s893_s1, %s549_s27  ;;  %v633_v9 = vld [vmem:[%s894_s2 + $0x18] sm:$0xff]   ;;  %v635_v12 = vld [vmem:[%s894_s2 + $0x10] sm:$0xff]   ;;  %s648_s27 = sshll.u32 %s708_s19, 4  ;;  %s649_s27 = int_to_ptr.vmem [resolvable:$false] %s648_s27 }
  0x17   : > { %v642_v11 = vld [vmem:[%s195_s6 + $0x4] ss:$8 sps:$4 sm:$0xff]   ;;  %v640_v17 = vld [vmem:[%s195_s6] ss:$8 sps:$4 sm:$0xff]   ;;  %s188_s6 = sand.u32 1, %s696_s16   ;;  %s650_s28 = scalar_lea.vmem %s649_s27, 512 }
  0x18   : > { %369 = vmatprep.mubr.bf16.mxu0 %v642_v11  ;;  %v636_v13 = vld [vmem:[%s894_s2 + $0x48] sm:$0xff]   ;;  %v638_v15 = vld [vmem:[%s894_s2 + $0x40] sm:$0xff]   ;;  %s520_s7 = sshll.u32 %s188_s6, 4  ;;  %s852_s22 = scalar_lea.sflag [#allocation3], %s188_s6 }
  0x19   : > { %554 = vmatpush3.bf16.msra.mxu0 %v627_v3  ;;  %v637_v14 = vld [vmem:[%s894_s2 + $0x8] sm:$0xff]   ;;  %v639_v16 = vld [vmem:[%s894_s2] sm:$0xff]   ;;  %s190_s10 = scalar_lea.vmem [#allocation2], %s520_s7 }
  0x1a   : > { %555 = vmatprep.subr.bf16.mxu0 %v628_v4  ;;  %v643_v26 = vld [vmem:[%s892_s0] sm:$0xff]   ;;  %s454_s11 = sshll.u32 %s190_s10, 4  ;;  %s845_s11 = int_to_ptr.vmem [resolvable:$true] %s454_s11 }
  0x1b   : > { %v541_v27 = vld [vmem:[%s895_s3] ss:$0 sm:$0xff]  ;;  %s644_s23 = scalar_lea.vmem %s845_s11, 256  ;;  %p651_p0 = scmp.lt.s32.totalorder %s845_s11, %s649_s27 }
  0x1c   : > { %p645_p11 = scmp.ne.s32.totalorder %s845_s11, %s644_s23  ;;  %p652_p1 = scmp.lt.s32.totalorder %s650_s28, %s644_s23 }
  0x1d   : > { %556 = vmatpush3.bf16.msra.mxu0 %v629_v5 }
  0x1e   : > { %557 = vmatprep.subr.bf16.mxu0 %v630_v6  ;;  %p646_p12 = pnand %p645_p11, %p774_p5  ;;  %p653_p2 = por %p652_p1, %p651_p0 }
  0x20   : > { %p647_p13 = pneg %p646_p12 }
  0x21   : > { %558 = vmatpush3.bf16.msra.mxu0 %v631_v7 }
  0x22   : > { %559 = vmatprep.subr.bf16.mxu0 %v632_v8  ;;  %p654_p3 = pnand %p653_p2, %p647_p13 }
  0x25   : > { %560 = vmatpush3.bf16.msra.mxu0 %v633_v9 }
  0x26   : > { %561 = vmatprep.subr.bf16.mxu0 %v634_v10 }
  0x29   : > { %562 = vmatpush3.bf16.msra.mxu0 %v635_v12 }
  0x2a   : > { %563 = vmatprep.subr.bf16.mxu0 %v636_v13 }
  0x2d   : > { %564 = vmatpush3.bf16.msra.mxu0 %v637_v14 }
  0x2e   : > { %565 = vmatprep.subr.bf16.mxu0 %v638_v15 }
  0x31   : > { %566 = vmatpush3.bf16.msra.mxu0 %v639_v16 }
  0x34   : > { %370 = vmatmul.mubr.bf16.vlgmr.msra.gmra.mxu0 %v640_v17 }
  0xf4   : > { %v567_v19 = vpop.f32.mrf.mxu0 }
  0xf6   : > { %v568_v20 = vpop.f32.mrf.mxu0 }
  0xf7   : > { %v569_v23 = vadd.f32 %v568_v20, %v567_v19 }
  0xf8   : > { %v570_v21 = vpop.f32.mrf.mxu0 }
  0xfa   : > { %v571_v22 = vpop.f32.mrf.mxu0 }
  0xfb   : > { %v572_v24 = vadd.f32 %v571_v22, %v570_v21 }
  0xfd   : > { %v380_v25 = vpack.c.bf16 %v572_v24, %v569_v23 }
  0xff   : > { %576 = vmatpush3.bf16.msra.mxu1 %v380_v25 }
 0x102   : > { %578 = vmatmul.mubr.msk.bf16.vlgmr.msra.gmra.mxu1 %vm393_vm1, %v643_v26 }
 0x1c2   : > { %v431_v28 = vpop.f32.mrf.mxu1 }
 0x1c3   : > { %v432_v29 = vadd.f32 %v541_v27, %v431_v28 }
 0x1c4   : > { %v579_v30 = vpop.f32.mrf.mxu1 }
 0x1c5   : > { %438 = vst [vmem:[%s190_s10] sm:$0xff] %v432_v29 }
 0x1c6   : > { %v434_v31 = vpop.f32.mrf.mxu1 }
 0x1c7   : > { %v435_v32 = vadd.f32 %v541_v27, %v434_v31 }
 0x1c8   : > { %v580_v33 = vpop.f32.mrf.mxu1 }
 0x1c9   : > { %439 = vst [vmem:[%s190_s10 + $0x8] sm:$0xff] %v435_v32 }
 0x1ca   : > { %657 = shalt.err (!%p654_p3)
}
 0x1cb   : > { %s658_s29 = scalar_lea.hbm %s850_s20, 256  ;;  %s662_s6 = scalar_lea.hbm %s896_s4, 1024 }
 0x1cc   : > { %p659_p4 = scmp.ne.s32.totalorder %s850_s20, %s658_s29  ;;  %p663_p9 = scmp.lt.s32.totalorder %s850_s20, %s896_s4 }
 0x1cd   : > { %p664_p10 = scmp.lt.s32.totalorder %s662_s6, %s658_s29 }
 0x1ce   : > { %p660_p7 = pnand %p659_p4, %p774_p5 }
 0x1cf   : > { %p665_p11 = por %p664_p10, %p663_p9 }
 0x1d0   : > { %p661_p8 = pneg %p660_p7 }
 0x1d2   : > { %p666_p12 = pnand %p665_p11, %p661_p8 }
 0x1d4   : > { %669 = shalt.err (!%p666_p12)
}
 0x1d5   : > { %s709_s9 = smov 128   ;;  %s710_s10 = smov 8  }
 0x1d6   : > { %581 = dma.vmem_to_hbm [thread:$0]  (%p774_p5), %s845_s11, 256, %s850_s20, %s852_s22, %s709_s9, %s709_s9, %s710_s10  }
 0x1d7 PF: > { %p587_p13 = scmp.ge.s32.totalorder %s704_s18, 2  ;;  %s469_s12 = sand.u32 1, %s692_s15  }
 0x1d8   : > { %s470_s13 = scalar_lea.sflag [#allocation3], %s469_s12 }
 0x1d9   : > { %p584_p0 = pnand %p587_p13, %p778_p6 }
 0x1db   : > { %p585_p1 = pneg %p584_p0 }
 0x1dd   : > { %687 = dma.done.wait (%p585_p1), %s470_s13, 256  }
 0x1de   : > { %689 = vsyncadd (%p585_p1), %s470_s13, 4294967040  ;;  %p14_p2 = scmp.ge.s32.totalorder %s761_s21, 6   ;;  %s899_s15 = smov %s696_s16 }
 0x1df   : > { %s900_s16 = smov %s700_s17  ;;  %s901_s17 = smov %s772_s24 }
 0x1e0   : > { %s902_s18 = smov %s761_s21  ;;  %16 = sbr.rel (!%p14_p2) target bundleno = 3 (0x3), region = 71 }
 0x1e5   :  { %475 = vsyncpa [#allocation3], 1 }
 0x1e6   :  { %477 = vsyncpa [#allocation3 + $0x1], 1 }

</bundles_post_ra>
